<compile_context>
chip_gen: v5e
topology: v5e:2x2
jax: 0.10.0
libtpu: 0.0.40
codegen_flags: <defaults>
</compile_context>

<pallas_src>
import functools

import jax
import jax.numpy as jnp
from jax.experimental import pallas as pl
from jax.experimental.pallas import tpu as pltpu


def _round_up(n, m):
    return ((n + m - 1) // m) * m


def resblock_kernel(x_ref, w1_ref, b1_ref, w2_ref, b2_ref, o_ref):
    x = x_ref[...]
    x_f32 = x.astype(jnp.float32)

    # fc1 + ReLU   (MXU matmul, f32 accumulation; elementwise kept in f32)
    h = jnp.dot(x.astype(w1_ref.dtype), w1_ref[...],
                preferred_element_type=jnp.float32)
    h = jnp.maximum(h + b1_ref[...].astype(jnp.float32), 0.0)

    # fc2 + residual + ReLU
    y = jnp.dot(h.astype(w2_ref.dtype), w2_ref[...],
                preferred_element_type=jnp.float32)
    y = y + b2_ref[...].astype(jnp.float32) + x_f32
    o_ref[...] = jnp.maximum(y, 0.0).astype(o_ref.dtype)


@functools.partial(jax.jit, static_argnames=("block_batch", "weights_dtype"))
def resblock(x, w1, b1, w2, b2, *, block_batch=512, weights_dtype=None):
    B, C = x.shape
    assert w1.shape == (C, C) and w2.shape == (C, C), "residual needs in == out"

    if weights_dtype is not None:
        # bf16 weights for v6e/v7x; biases stay f32 (added post-matmul in f32).
        w1 = w1.astype(weights_dtype)
        w2 = w2.astype(weights_dtype)

    # --- Lane-dense feature axis: pad C up to a multiple of 128. -------------
    C_pad = _round_up(C, 128)

    # --- Batch tile: as big as VMEM allows, never smaller than 8 rows. -------
    bb = _round_up(min(block_batch, _round_up(B, 8)), 8)

    x_bytes = jnp.dtype(x.dtype).itemsize
    w_bytes = jnp.dtype(w1.dtype).itemsize

    def vmem_need(bb_):
        weights = 2 * C_pad * C_pad * w_bytes       # W1 + W2, single-buffered
        biases = 2 * C_pad * 4
        io_tiles = 2 * 2 * bb_ * C_pad * x_bytes    # x + out tiles, double-buffered
        interm = 3 * bb_ * C_pad * 4                # f32 temporaries (h, y, x_f32)
        return weights + biases + io_tiles + interm

    VMEM_BUDGET = 48 * 1024 * 1024                  # safe on v5e/v6e and v7x (64 MiB)
    while bb > 8 and vmem_need(bb) > VMEM_BUDGET:
        bb //= 2
    # TODO(synk): if C is large enough that the resident CxC weights alone blow
    # the budget (f32 C >~ 2048 on v7x), tile the weights over a trailing
    # "arbitrary" K/N grid axis with an f32 accumulator scratch instead.

    B_pad = _round_up(B, bb)

    # Zero padding is inert: padded feature lanes stay 0 through both layers
    # and padded batch rows are sliced off below.
    xp = jnp.pad(x, ((0, B_pad - B), (0, C_pad - C)))
    w1p = jnp.pad(w1, ((0, C_pad - C), (0, C_pad - C)))
    w2p = jnp.pad(w2, ((0, C_pad - C), (0, C_pad - C)))
    b1p = jnp.pad(b1, ((0, 0), (0, C_pad - C)))
    b2p = jnp.pad(b2, ((0, 0), (0, C_pad - C)))

    vmem_limit = int(min(max(2 * vmem_need(bb), 32 * 1024 * 1024),
                         56 * 1024 * 1024))

    const_map = lambda i: (0, 0)
    out = pl.pallas_call(
        resblock_kernel,
        out_shape=jax.ShapeDtypeStruct((B_pad, C_pad), x.dtype),
        grid_spec=pltpu.PrefetchScalarGridSpec(
            num_scalar_prefetch=0,
            grid=(B_pad // bb,),
            in_specs=[
                pl.BlockSpec((bb, C_pad), lambda i: (i, 0)),          # x tile
                pl.BlockSpec((C_pad, C_pad), const_map,
                             pipeline_mode=pl.Buffered(1)),           # W1 (in,out)
                pl.BlockSpec((1, C_pad), const_map,
                             pipeline_mode=pl.Buffered(1)),           # b1
                pl.BlockSpec((C_pad, C_pad), const_map,
                             pipeline_mode=pl.Buffered(1)),           # W2 (out,out)
                pl.BlockSpec((1, C_pad), const_map,
                             pipeline_mode=pl.Buffered(1)),           # b2
            ],
            out_specs=pl.BlockSpec((bb, C_pad), lambda i: (i, 0)),
        ),
        compiler_params=pltpu.CompilerParams(
            dimension_semantics=("parallel",),
            vmem_limit_bytes=vmem_limit),
    )(xp, w1p, b1p, w2p, b2p)

    return out[:B, :C]


def init_params(key, in_channels, out_channels):
    # Mirrors nn.Linear's default U(-1/sqrt(fan_in), 1/sqrt(fan_in)).
    k1, k2, k3, k4 = jax.random.split(key, 4)
    bound1 = 1.0 / jnp.sqrt(in_channels)
    bound2 = 1.0 / jnp.sqrt(out_channels)
    # Stored already transposed: (in, out)
    w1 = jax.random.uniform(k1, (in_channels, out_channels), jnp.float32,
                            -bound1, bound1)
    b1 = jax.random.uniform(k2, (1, out_channels), jnp.float32, -bound1, bound1)
    w2 = jax.random.uniform(k3, (out_channels, out_channels), jnp.float32,
                            -bound2, bound2)
    b2 = jax.random.uniform(k4, (1, out_channels), jnp.float32, -bound2, bound2)
    return w1, b1, w2, b2


def resblock_ref(x, w1, b1, w2, b2):
    h = jnp.maximum(x @ w1 + b1, 0.0)
    y = h @ w2 + b2 + x
    return jnp.maximum(y, 0.0)


if __name__ == "__main__":
    key = jax.random.PRNGKey(0)
    kx, kp = jax.random.split(key)

    batch, channels = 8, 32          # in_channels == out_channels (residual add)
    x = jax.random.normal(kx, (batch, channels), jnp.float32)
    w1, b1, w2, b2 = init_params(kp, channels, channels)

    ref = resblock_ref(x, w1, b1, w2, b2)

    # f32 weights: exact-ish match against the reference.
    out = jax.block_until_ready(resblock(x, w1, b1, w2, b2))
    assert out.shape == ref.shape
    assert jnp.allclose(out, ref, atol=1e-5, rtol=1e-5), "f32 mismatch vs reference"

    # bf16-weight path (v6e/v7x recommendation): bf16 MXU inputs, f32 accumulation.
    out_bf16 = jax.block_until_ready(
        resblock(x, w1, b1, w2, b2, weights_dtype=jnp.bfloat16))
    assert jnp.allclose(out_bf16, ref, atol=1e-1, rtol=1e-1), "bf16 mismatch vs reference"

    print("KERNEL_OK")
</pallas_src>

<mosaic_0001>
module attributes {stable_mosaic.version = 11 : i64} {
  func.func @resblock_kernel(%arg0: i32, %arg1: memref<8x128xf32, #tpu.memory_space<vmem>>, %arg2: memref<128x128xf32, #tpu.memory_space<vmem>>, %arg3: memref<1x128xf32, #tpu.memory_space<vmem>>, %arg4: memref<128x128xf32, #tpu.memory_space<vmem>>, %arg5: memref<1x128xf32, #tpu.memory_space<vmem>>, %arg6: memref<8x128xf32, #tpu.memory_space<vmem>>) attributes {dimension_semantics = [#tpu.dimension_semantics<parallel>], iteration_bounds = array<i64: 1>, scalar_prefetch = 0 : i64, scratch_operands = 0 : i64, tpu.core_type = #tpu.core_type<tc>, window_params = [{transform_indices = @transform_0, window_bounds = array<i64: 8, 128>}, {pipeline_mode = #tpu.pipeline_mode<synchronous>, transform_indices = @transform_1, window_bounds = array<i64: 128, 128>}, {pipeline_mode = #tpu.pipeline_mode<synchronous>, transform_indices = @transform_2, window_bounds = array<i64: 1, 128>}, {pipeline_mode = #tpu.pipeline_mode<synchronous>, transform_indices = @transform_3, window_bounds = array<i64: 128, 128>}, {pipeline_mode = #tpu.pipeline_mode<synchronous>, transform_indices = @transform_4, window_bounds = array<i64: 1, 128>}, {transform_indices = @transform_5, window_bounds = array<i64: 8, 128>}]} {
    %c0 = arith.constant 0 : index
    %c0_0 = arith.constant 0 : index
    %0 = vector.load %arg1[%c0, %c0_0] : memref<8x128xf32, #tpu.memory_space<vmem>>, vector<8x128xf32>
    %c0_1 = arith.constant 0 : index
    %c0_2 = arith.constant 0 : index
    %1 = vector.load %arg2[%c0_1, %c0_2] : memref<128x128xf32, #tpu.memory_space<vmem>>, vector<128x128xf32>
    %cst = arith.constant dense<0.000000e+00> : vector<8x128xf32>
    %2 = tpu.matmul %0, %1, %cst {dimension_numbers = #tpu.dot_dimension_numbers<[1], [0], [0], [1], [0, 0, 1, 1], [], []>} : vector<8x128xf32>, vector<128x128xf32>, vector<8x128xf32> -> vector<8x128xf32>
    %c0_3 = arith.constant 0 : index
    %c0_4 = arith.constant 0 : index
    %3 = vector.load %arg3[%c0_3, %c0_4] : memref<1x128xf32, #tpu.memory_space<vmem>>, vector<1x128xf32>
    %4 = vector.broadcast %3 : vector<1x128xf32> to vector<8x128xf32>
    %5 = arith.addf %2, %4 : vector<8x128xf32>
    %cst_5 = arith.constant 0.000000e+00 : f32
    %6 = vector.broadcast %cst_5 : f32 to vector<8x128xf32>
    %7 = arith.maximumf %5, %6 : vector<8x128xf32>
    %c0_6 = arith.constant 0 : index
    %c0_7 = arith.constant 0 : index
    %8 = vector.load %arg4[%c0_6, %c0_7] : memref<128x128xf32, #tpu.memory_space<vmem>>, vector<128x128xf32>
    %cst_8 = arith.constant dense<0.000000e+00> : vector<8x128xf32>
    %9 = tpu.matmul %7, %8, %cst_8 {dimension_numbers = #tpu.dot_dimension_numbers<[1], [0], [0], [1], [0, 0, 1, 1], [], []>} : vector<8x128xf32>, vector<128x128xf32>, vector<8x128xf32> -> vector<8x128xf32>
    %c0_9 = arith.constant 0 : index
    %c0_10 = arith.constant 0 : index
    %10 = vector.load %arg5[%c0_9, %c0_10] : memref<1x128xf32, #tpu.memory_space<vmem>>, vector<1x128xf32>
    %11 = vector.broadcast %10 : vector<1x128xf32> to vector<8x128xf32>
    %12 = arith.addf %9, %11 : vector<8x128xf32>
    %13 = arith.addf %12, %0 : vector<8x128xf32>
    %cst_11 = arith.constant 0.000000e+00 : f32
    %14 = vector.broadcast %cst_11 : f32 to vector<8x128xf32>
    %15 = arith.maximumf %13, %14 : vector<8x128xf32>
    %c0_12 = arith.constant 0 : index
    %c0_13 = arith.constant 0 : index
    %16 = vector.load %arg6[%c0_12, %c0_13] : memref<8x128xf32, #tpu.memory_space<vmem>>, vector<8x128xf32>
    tpu.vector_store %arg6[%c0_12, %c0_13], %15 {strides = array<i32>} : memref<8x128xf32, #tpu.memory_space<vmem>>, vector<8x128xf32>,
    return
  }
  func.func @transform_0(%arg0: i32) -> (i32, i32) {
    %c0_i32 = arith.constant 0 : i32
    %c0_i32_0 = arith.constant 0 : i32
    return %arg0, %c0_i32 : i32, i32
  }
  func.func @transform_1(%arg0: i32) -> (i32, i32) {
    %c0_i32 = arith.constant 0 : i32
    %c0_i32_0 = arith.constant 0 : i32
    %c0_i32_1 = arith.constant 0 : i32
    return %c0_i32, %c0_i32_0 : i32, i32
  }
  func.func @transform_2(%arg0: i32) -> (i32, i32) {
    %c0_i32 = arith.constant 0 : i32
    %c0_i32_0 = arith.constant 0 : i32
    %c0_i32_1 = arith.constant 0 : i32
    return %c0_i32, %c0_i32_0 : i32, i32
  }
  func.func @transform_3(%arg0: i32) -> (i32, i32) {
    %c0_i32 = arith.constant 0 : i32
    %c0_i32_0 = arith.constant 0 : i32
    %c0_i32_1 = arith.constant 0 : i32
    return %c0_i32, %c0_i32_0 : i32, i32
  }
  func.func @transform_4(%arg0: i32) -> (i32, i32) {
    %c0_i32 = arith.constant 0 : i32
    %c0_i32_0 = arith.constant 0 : i32
    %c0_i32_1 = arith.constant 0 : i32
    return %c0_i32, %c0_i32_0 : i32, i32
  }
  func.func @transform_5(%arg0: i32) -> (i32, i32) {
    %c0_i32 = arith.constant 0 : i32
    %c0_i32_0 = arith.constant 0 : i32
    return %arg0, %c0_i32 : i32, i32
  }
}

</mosaic_0001>

<bundles_post_ra>
// kernel: resblock.1
= control target key start
LH: loop header
LB: loop body
LE: loop exit
PB: predicated region body
PF: predicated region fallthrough
CT: control target
= control target key end

     0   :  { %s290_s0 = inlined_call_operand.vmem [shape: f32[8,128], index: 0, kind: input, shape index: {}]   ;;  %s291_s1 = inlined_call_operand.vmem [shape: f32[128,128], index: 1, kind: input, shape index: {}]   ;;  %s292_s2 = inlined_call_operand.vmem [shape: f32[1,128], index: 2, kind: input, shape index: {}]   ;;  %s293_s3 = inlined_call_operand.vmem [shape: f32[128,128], index: 3, kind: input, shape index: {}]   ;;  %s294_s4 = inlined_call_operand.vmem [shape: f32[1,128], index: 4, kind: input, shape index: {}]   ;;  %s295_s5 = inlined_call_operand.hbm [shape: f32[8,128], index: 5, kind: output, shape index: {}]  }
   0x1   :  { %v37_v0 = vld [vmem:[%s291_s1 + $0x78] sm:$0xff]  ;;  %v36_v1 = vld [vmem:[%s291_s1 + $0x70] sm:$0xff]  ;;  %v35_v2 = vld [vmem:[%s291_s1 + $0x68] sm:$0xff] }
   0x2   :  { %42 = vmatpush.msra.mxu0 %v37_v0  ;;  %v34_v3 = vld [vmem:[%s291_s1 + $0x60] sm:$0xff]  ;;  %v78_v4 = vld [vmem:[%s293_s3 + $0x78] sm:$0xff]  ;;  %v77_v6 = vld [vmem:[%s293_s3 + $0x70] sm:$0xff] }
   0x3   :  { %v33_v5 = vld [vmem:[%s291_s1 + $0x58] sm:$0xff]  ;;  %83 = vmatpush.msra.mxu1 %v78_v4  ;;  %v76_v7 = vld [vmem:[%s293_s3 + $0x68] sm:$0xff]  ;;  %v32_v8 = vld [vmem:[%s291_s1 + $0x50] sm:$0xff] }
   0x4   :  { %43 = vmatpush.msra.mxu0 %v36_v1  ;;  %v75_v9 = vld [vmem:[%s293_s3 + $0x60] sm:$0xff]  ;;  %v31_v10 = vld [vmem:[%s291_s1 + $0x48] sm:$0xff]  ;;  %v74_v11 = vld [vmem:[%s293_s3 + $0x58] sm:$0xff] }
   0x5   :  { %84 = vmatpush.msra.mxu1 %v77_v6 }
   0x6   :  { %44 = vmatpush.msra.mxu0 %v35_v2 }
   0x7   :  { %85 = vmatpush.msra.mxu1 %v76_v7 }
   0x8   :  { %45 = vmatpush.msra.mxu0 %v34_v3 }
   0xa   :  { %46 = vmatpush.msra.mxu0 %v33_v5 }
   0xc   :  { %47 = vmatpush.msra.mxu0 %v32_v8 }
   0xd   :  { %10 = vsyncpa [#allocation3], 0  ;;  %v30_v12 = vld [vmem:[%s291_s1 + $0x40] sm:$0xff]  ;;  %86 = vmatpush.msra.mxu1 %v75_v9  ;;  %v73_v13 = vld [vmem:[%s293_s3 + $0x50] sm:$0xff]  ;;  %s151_s11 = smov [#allocation2]  }
   0xe   :  { %48 = vmatpush.msra.mxu0 %v31_v10  ;;  %v29_v14 = vld [vmem:[%s291_s1 + $0x38] sm:$0xff]  ;;  %v72_v15 = vld [vmem:[%s293_s3 + $0x48] sm:$0xff]  ;;  %v28_v16 = vld [vmem:[%s291_s1 + $0x30] sm:$0xff]  ;;  %s111_s12 = sshll.u32 %s151_s11, 4  ;;  %s112_s12 = int_to_ptr.vmem [resolvable:$true] %s111_s12 }
   0xf   :  { %87 = vmatpush.msra.mxu1 %v74_v11  ;;  %v71_v17 = vld [vmem:[%s293_s3 + $0x40] sm:$0xff]  ;;  %v27_v18 = vld [vmem:[%s291_s1 + $0x28] sm:$0xff]  ;;  %v70_v19 = vld [vmem:[%s293_s3 + $0x38] sm:$0xff] }
  0x10   :  { %49 = vmatpush.msra.mxu0 %v30_v12  ;;  %v26_v20 = vld [vmem:[%s291_s1 + $0x20] sm:$0xff]  ;;  %v69_v21 = vld [vmem:[%s293_s3 + $0x30] sm:$0xff]  ;;  %v25_v22 = vld [vmem:[%s291_s1 + $0x18] sm:$0xff] }
  0x11   :  { %88 = vmatpush.msra.mxu1 %v73_v13  ;;  %v68_v23 = vld [vmem:[%s293_s3 + $0x28] sm:$0xff]  ;;  %v24_v24 = vld [vmem:[%s291_s1 + $0x10] sm:$0xff]  ;;  %v67_v25 = vld [vmem:[%s293_s3 + $0x20] sm:$0xff] }
  0x12   :  { %50 = vmatpush.msra.mxu0 %v29_v14  ;;  %v23_v26 = vld [vmem:[%s291_s1 + $0x8] sm:$0xff]  ;;  %v66_v27 = vld [vmem:[%s293_s3 + $0x18] sm:$0xff]  ;;  %v22_v28 = vld [vmem:[%s291_s1] sm:$0xff] }
  0x13   :  { %89 = vmatpush.msra.mxu1 %v72_v15  ;;  %v21_v29 = vld [vmem:[%s290_s0] sm:$0xff]  ;;  %v65_v30 = vld [vmem:[%s293_s3 + $0x10] sm:$0xff]  ;;  %v64_v31 = vld [vmem:[%s293_s3 + $0x8] sm:$0xff] }
  0x14   :  { %51 = vmatpush.msra.mxu0 %v28_v16  ;;  %v63_v32 = vld [vmem:[%s293_s3] sm:$0xff]  ;;  %s113_s3 = sshll.u32 %s295_s5, 4  ;;  %s114_s3 = int_to_ptr.hbm [resolvable:$true] %s113_s3 }
  0x15   :  { %90 = vmatpush.msra.mxu1 %v71_v17  ;;  %v123_v33 = vld [vmem:[%s292_s2] ss:$0 sm:$0xff] }
  0x16   :  { %52 = vmatpush.msra.mxu0 %v27_v18  ;;  %v124_v37 = vld [vmem:[%s294_s4] ss:$0 sm:$0xff] }
  0x17   :  { %91 = vmatpush.msra.mxu1 %v70_v19 }
  0x18   :  { %53 = vmatpush.msra.mxu0 %v26_v20 }
  0x19   :  { %92 = vmatpush.msra.mxu1 %v69_v21 }
  0x1a   :  { %54 = vmatpush.msra.mxu0 %v25_v22 }
  0x1b   :  { %93 = vmatpush.msra.mxu1 %v68_v23 }
  0x1c   :  { %55 = vmatpush.msra.mxu0 %v24_v24 }
  0x1d   :  { %94 = vmatpush.msra.mxu1 %v67_v25 }
  0x1e   :  { %56 = vmatpush.msra.mxu0 %v23_v26 }
  0x1f   :  { %95 = vmatpush.msra.mxu1 %v66_v27 }
  0x20   :  { %57 = vmatpush.msra.mxu0 %v22_v28 }
  0x21   :  { %58 = vmatmul.f32.vlgmr.msra.gmra.mxu0 %v21_v29  ;;  %96 = vmatpush.msra.mxu1 %v65_v30 }
  0x23   :  { %97 = vmatpush.msra.mxu1 %v64_v31 }
  0x25   :  { %98 = vmatpush.msra.mxu1 %v63_v32 }
  0x9e   :  { %v59_v34 = vpop.f32.mrf.mxu0 }
  0x9f   :  { %v60_v35 = vadd.f32 %v123_v33, %v59_v34 }
  0xa1   :  { %v62_v36 = vmax.f32 %v60_v35, 0.0 }
  0xa3   :  { %99 = vmatmul.f32.vlgmr.msra.gmra.mxu1 %v62_v36 }
 0x120   :  { %v100_v38 = vpop.f32.mrf.mxu1 }
 0x121   :  { %v101_v39 = vadd.f32 %v124_v37, %v100_v38 }
 0x123   :  { %v103_v40 = vadd.f32 %v101_v39, %v21_v29 }
 0x125   :  { %v104_v41 = vmax.f32 %v103_v40, 0.0 }
 0x127   :  { %105 = vst [vmem:[#allocation2] sm:$0xff] %v104_v41 }
 0x128   :  { %116 = dma.vmem_to_hbm [thread:$0]  %s112_s12, 128, %s114_s3, [#allocation3]  }
 0x129   :  { %149 = dma.done.wait [#allocation3], 128  }
 0x12a   :  { %150 = vsyncadd [#allocation3], 4294967168 }
 0x12b   :  { %121 = vsyncpa [#allocation3], 1 }

</bundles_post_ra>
